<compile_context>
chip_gen: v6e
topology: v6e:2x2x1
jax: 0.10.0
libtpu: 0.0.40
codegen_flags: <defaults>
</compile_context>

<pallas_src>
import functools

import jax
import jax.numpy as jnp
from jax.experimental import pallas as pl
from jax.experimental.pallas import tpu as pltpu

SCALE = 1.0 / 64.0          # deterministic calibration result
INV_SCALE = 64.0
ZERO_POINT = 128.0          # quint8 zero point
_Q_LO = 0.0 - ZERO_POINT    # clamp bounds with zp folded in: [-128, 127]
_Q_HI = 255.0 - ZERO_POINT

LANES = 128
SUBLANES = 8
_PAD_UNIT = SUBLANES * LANES            # 1024 elements: minimal (8,128)-friendly pad
_BIG_BLOCK_ROWS = 4096                  # 4096 x 128 f32 = 2 MiB per buffer
_MIN_BLOCKS_FOR_PARALLEL = 4            # keep >= 4 blocks so v7x megacore has work
_SMALL_FUSE_THRESHOLD = 1 << 16         # below this, plain XLA elementwise (it fuses)


def _fake_quant_math(x):
    """clip(round(x/scale), -zp, 255-zp) * scale  (zero-point folded into the clamp)."""
    q = jnp.clip(jnp.round(x * INV_SCALE), _Q_LO, _Q_HI)   # round-half-to-even, like PyTorch
    return q * SCALE


def fake_quant_kernel(x_ref, o_ref):
    """Quantize-then-dequantize (per-tensor affine, quint8) on one lane-dense VMEM tile."""
    o_ref[...] = _fake_quant_math(x_ref[...]).astype(o_ref.dtype)


def _round_up(a: int, m: int) -> int:
    return ((a + m - 1) // m) * m


def _fake_quant_2d(x2: jax.Array, block_rows: int, alias_io: bool) -> jax.Array:
    """Run the kernel on a lane-dense (rows, 128) f32 array; ragged last block is masked."""
    rows, lanes = x2.shape
    grid = (pl.cdiv(rows, block_rows),)
    return pl.pallas_call(
        fake_quant_kernel,
        out_shape=jax.ShapeDtypeStruct((rows, lanes), jnp.float32),
        grid_spec=pltpu.PrefetchScalarGridSpec(
            num_scalar_prefetch=0,
            grid=grid,
            in_specs=[pl.BlockSpec((block_rows, lanes), lambda i: (i, 0))],
            out_specs=pl.BlockSpec((block_rows, lanes), lambda i: (i, 0)),
        ),
        compiler_params=pltpu.CompilerParams(
            # v7x: shard the (independent) row-block axis across both TensorCores.
            dimension_semantics=("parallel",),
        ),
        # Alias only when x2 is a fresh padded intermediate (no defensive copy needed).
        input_output_aliases={0: 0} if alias_io else {},
    )(x2)


@functools.partial(jax.jit, static_argnames=("force_pallas",))
def quantized_no_layer(x: jax.Array, *, force_pallas: bool = False) -> jax.Array:
    """Fake-quant round trip for an arbitrary-shaped tensor (QuantStub -> DeQuantStub)."""
    orig_shape = x.shape
    orig_dtype = x.dtype
    xf = x.astype(jnp.float32)
    n = xf.size

    if not force_pallas and n < _SMALL_FUSE_THRESHOLD:
        # Tiny tensors: pallas_call launch / DMA-setup overhead would dominate;
        # plain elementwise lets XLA fuse this into the neighbouring ops.
        return _fake_quant_math(xf).astype(orig_dtype)

    flat = jnp.ravel(xf)
    n_pad = _round_up(n, _PAD_UNIT)
    padded = n_pad != n
    if padded:
        flat = jnp.pad(flat, (0, n_pad - n))
    rows = n_pad // LANES                      # always a multiple of 8
    x2 = flat.reshape(rows, LANES)             # lane-dense: unmasked 128-wide stores

    if rows <= _BIG_BLOCK_ROWS:
        block_rows = rows                      # single full-extent block
    else:
        block_rows = min(
            _BIG_BLOCK_ROWS,
            _round_up(-(-rows // _MIN_BLOCKS_FOR_PARALLEL), SUBLANES),
        )

    out2 = _fake_quant_2d(x2, block_rows, alias_io=padded)
    out_flat = out2.reshape(-1)
    if padded:
        out_flat = out_flat[:n]
    return out_flat.reshape(orig_shape).astype(orig_dtype)


def _reference(x: jax.Array) -> jax.Array:
    # Original (un-folded) formulation, for cross-checking the algebraic fold.
    q = jnp.clip(jnp.round(x / SCALE) + ZERO_POINT, 0.0, 255.0)
    return (q - ZERO_POINT) * SCALE


if __name__ == "__main__":
    key = jax.random.PRNGKey(0)
    k1, k2, k3 = jax.random.split(key, 3)

    # Spec shape from the module annotation: ([1, 16], float32), values in [-1, 1).
    x = jax.random.uniform(k1, (1, 16), dtype=jnp.float32, minval=-1.0, maxval=1.0)
    ref = _reference(x)

    # 1) Exercise the Pallas kernel at the spec shape (padded + aliased single-tile path).
    out_pallas = quantized_no_layer(x, force_pallas=True)
    jax.block_until_ready(out_pallas)
    assert out_pallas.shape == (1, 16) and out_pallas.dtype == jnp.float32
    assert jnp.allclose(out_pallas, ref, atol=1e-6), "mismatch vs reference (pallas, 1x16)"

    # 2) Default small-shape fast path must agree.
    out_small = quantized_no_layer(x)
    jax.block_until_ready(out_small)
    assert jnp.allclose(out_small, ref, atol=1e-6), "mismatch vs reference (fast path, 1x16)"

    # 3) No-pad, single-block Pallas path (n is a multiple of 1024; no alias, no extra passes).
    xb = jax.random.uniform(k2, (256, 300), dtype=jnp.float32, minval=-2.0, maxval=2.0)
    outb = quantized_no_layer(xb)
    jax.block_until_ready(outb)
    assert outb.shape == xb.shape and outb.dtype == jnp.float32
    assert jnp.allclose(outb, _reference(xb), atol=1e-6), "mismatch vs reference (256x300)"

    # 4) Multi-block Pallas path (rows > 4096 -> >= 4 parallel row-blocks).
    xc = jax.random.uniform(k3, (768, 1024), dtype=jnp.float32, minval=-2.0, maxval=2.0)
    outc = quantized_no_layer(xc)
    jax.block_until_ready(outc)
    assert outc.shape == xc.shape and outc.dtype == jnp.float32
    assert jnp.allclose(outc, _reference(xc), atol=1e-6), "mismatch vs reference (768x1024)"

    print("KERNEL_OK")
</pallas_src>

<mosaic_0001>
module attributes {stable_mosaic.version = 11 : i64} {
  func.func @fake_quant_kernel(%arg0: i32, %arg1: memref<8x128xf32, #tpu.memory_space<vmem>>, %arg2: memref<8x128xf32, #tpu.memory_space<vmem>>) attributes {dimension_semantics = [#tpu.dimension_semantics<parallel>], iteration_bounds = array<i64: 1>, scalar_prefetch = 0 : i64, scratch_operands = 0 : i64, tpu.core_type = #tpu.core_type<tc>, window_params = [{transform_indices = @transform_0, window_bounds = array<i64: 8, 128>}, {transform_indices = @transform_1, window_bounds = array<i64: 8, 128>}]} {
    %c0 = arith.constant 0 : index
    %c0_0 = arith.constant 0 : index
    %0 = vector.load %arg1[%c0, %c0_0] : memref<8x128xf32, #tpu.memory_space<vmem>>, vector<8x128xf32>
    %cst = arith.constant 6.400000e+01 : f32
    %1 = vector.broadcast %cst : f32 to vector<8x128xf32>
    %2 = arith.mulf %0, %1 : vector<8x128xf32>
    %3 = math.roundeven %2 : vector<8x128xf32>
    %cst_1 = arith.constant -1.280000e+02 : f32
    %cst_2 = arith.constant 1.270000e+02 : f32
    %4 = vector.broadcast %cst_1 : f32 to vector<8x128xf32>
    %5 = arith.maximumf %4, %3 : vector<8x128xf32>
    %6 = vector.broadcast %cst_2 : f32 to vector<8x128xf32>
    %7 = arith.minimumf %6, %5 : vector<8x128xf32>
    %cst_3 = arith.constant 1.562500e-02 : f32
    %8 = vector.broadcast %cst_3 : f32 to vector<8x128xf32>
    %9 = arith.mulf %7, %8 : vector<8x128xf32>
    %c0_4 = arith.constant 0 : index
    %c0_5 = arith.constant 0 : index
    %10 = vector.load %arg2[%c0_4, %c0_5] : memref<8x128xf32, #tpu.memory_space<vmem>>, vector<8x128xf32>
    tpu.vector_store %arg2[%c0_4, %c0_5], %9 {strides = array<i32>} : memref<8x128xf32, #tpu.memory_space<vmem>>, vector<8x128xf32>,
    return
  }
  func.func @transform_0(%arg0: i32) -> (i32, i32) {
    %c0_i32 = arith.constant 0 : i32
    %c0_i32_0 = arith.constant 0 : i32
    return %arg0, %c0_i32 : i32, i32
  }
  func.func @transform_1(%arg0: i32) -> (i32, i32) {
    %c0_i32 = arith.constant 0 : i32
    %c0_i32_0 = arith.constant 0 : i32
    return %arg0, %c0_i32 : i32, i32
  }
}

</mosaic_0001>

<bundles_post_ra>
// kernel: quantized_no_layer.1
= control target key start
LH: loop header
LB: loop body
LE: loop exit
PB: predicated region body
PF: predicated region fallthrough
CT: control target
= control target key end

     0   :  { %s43_s0 = inlined_call_operand.vmem [shape: f32[8,128], index: 0, kind: input, shape index: {}, may-alias: {0,1}]   ;;  %s44_s1 = inlined_call_operand.vmem [shape: f32[8,128], index: 1, kind: output, shape index: {}, may-alias: {0,1}]  }
   0x1   :  { %v8_v0 = vld [vmem:[%s43_s0] sm:$0xff] }
   0x2   :  { %v9_v1 = vmul.f32 64.0, %v8_v0 }
   0x4   :  { %v21_v2 = vcvt.f32.s32 %v9_v1  ;;  %v19_v3 = vand.u32 2147483647, %v9_v1  ;;  %v24_v5 = vand.u32 2147483648, %v9_v1 }
   0x6   :  { %v22_v4 = vcvt.s32.f32 %v21_v2  ;;  %vm20_vm0 = vcmp.lt.f32.partialorder %v19_v3, 8388608.0 }
   0x8   :  { %v23_v6 = vand.u32 2147483647, %v22_v4 }
   0xa   :  { %v25_v7 = vor.u32 %v24_v5, %v23_v6 }
   0xc   :  { %v26_v8 = vsel %vm20_vm0, %v25_v7, %v9_v1 }
   0xd   :  { %v11_v9 = vmax.f32 %v26_v8, -128.0 }
   0xf   :  { %v12_v10 = vmin.f32 %v11_v9, 127.0 }
  0x11   :  { %v13_v11 = vmul.f32 0.015625, %v12_v10 }
  0x13   :  { %14 = vst [vmem:[%s44_s1] sm:$0xff] %v13_v11 }

</bundles_post_ra>
